<compile_context>
chip_gen: v7x
topology: tpu7x:2x2x1
jax: 0.10.0
libtpu: 0.0.40
codegen_flags: <defaults>
</compile_context>

<pallas_src>
import functools

import jax
import jax.numpy as jnp
from jax.experimental import pallas as pl
from jax.experimental.pallas import tpu as pltpu


def _round_up(x, m):
    return (x + m - 1) // m * m


# --------------------------------------------------------------------------------
# Phase 1: conv GEMM + per-tile BN partial sums (sum, sum of squares) per channel.
# --------------------------------------------------------------------------------
def _conv_stats_kernel(p_ref, w_ref, y_ref, ps_ref):
    # p_ref : (TM, Kp)     patches tile
    # w_ref : (Kp, Cp)     weight (VMEM-resident across the grid)
    # y_ref : (TM, Cp)     pre-BN conv output tile
    # ps_ref: (1, 2, Cp)   per-tile [sum; sum_of_squares] over the TM rows
    y = jnp.dot(p_ref[...], w_ref[...], preferred_element_type=jnp.float32)
    y_ref[...] = y
    s = jnp.sum(y, axis=0, keepdims=True)        # (1, Cp)
    sq = jnp.sum(y * y, axis=0, keepdims=True)   # (1, Cp)
    ps_ref[...] = jnp.concatenate([s, sq], axis=0)[None, :, :]


# --------------------------------------------------------------------------------
# Phase 2: apply the folded BatchNorm affine (y*scale + shift) and ReLU.
# --------------------------------------------------------------------------------
def _bn_relu_kernel(y_ref, scale_ref, shift_ref, o_ref):
    o_ref[...] = jnp.maximum(
        y_ref[...] * scale_ref[...] + shift_ref[...], 0.0
    ).astype(o_ref.dtype)


def _im2col(x, kh, kw, stride, padding, dilation):
    """x: (N, Cin, H, W) -> patches (N*OH*OW, Cin*KH*KW), plus (OH, OW)."""
    n, c, h, w = x.shape
    xp = jnp.pad(x, ((0, 0), (0, 0), (padding, padding), (padding, padding)))
    oh = (h + 2 * padding - dilation * (kh - 1) - 1) // stride + 1
    ow = (w + 2 * padding - dilation * (kw - 1) - 1) // stride + 1
    cols = []
    for i in range(kh):
        for j in range(kw):
            hi = i * dilation
            wi = j * dilation
            patch = xp[:, :,
                       hi:hi + stride * (oh - 1) + 1:stride,
                       wi:wi + stride * (ow - 1) + 1:stride]  # (N, Cin, OH, OW)
            cols.append(patch)
    # K index = cin*KH*KW + (i*KW + j) -- matches weight.reshape(Cout, Cin*KH*KW).
    patches = jnp.stack(cols, axis=2).reshape(n, c * kh * kw, oh, ow)
    patches = jnp.transpose(patches, (0, 2, 3, 1)).reshape(n * oh * ow, c * kh * kw)
    return patches, oh, ow


@functools.partial(
    jax.jit,
    static_argnames=("stride", "padding", "dilation", "block_m", "mxu_dtype"))
def conv_bn_relu(x, weight, bias, gamma, beta, *,
                 stride=1, padding=0, dilation=1,
                 block_m=256, mxu_dtype=jnp.float32):
    """Conv2d -> BatchNorm2d(training mode) -> ReLU.

    x: (N, Cin, H, W) NCHW.  weight: (Cout, Cin, KH, KW).  Returns (N, Cout, OH, OW).
    `bias` is accepted for API parity but intentionally unused: training-mode BN
    subtracts the per-channel batch mean, which cancels the conv bias exactly.
    """
    del bias  # exactly cancelled by the BN mean subtraction (training mode)

    n = x.shape[0]
    cout, cin, kh, kw = weight.shape
    patches, oh, ow = _im2col(x, kh, kw, stride, padding, dilation)   # (M, K) f32
    m, k = patches.shape

    # Pad to lane/MXU-friendly sizes.
    kp = _round_up(k, 128)
    cp = _round_up(cout, 128)
    tm = min(block_m, _round_up(m, 8))
    mp = _round_up(m, tm)
    num_m = mp // tm

    patches_p = jnp.pad(patches, ((0, mp - m), (0, kp - k)))           # (Mp, Kp)
    w2d = jnp.pad(weight.reshape(cout, k).T.astype(jnp.float32),
                  ((0, kp - k), (0, cp - cout)))                       # (Kp, Cp)

    if mxu_dtype != jnp.float32:
        patches_p = patches_p.astype(mxu_dtype)
        w2d = w2d.astype(mxu_dtype)

    itemsize = jnp.dtype(mxu_dtype).itemsize
    cost1 = pl.CostEstimate(
        flops=2 * mp * kp * cp,
        transcendentals=0,
        bytes_accessed=(mp * kp * itemsize + kp * cp * itemsize
                        + mp * cp * 4 + num_m * 2 * cp * 4))

    # ---- Phase 1: GEMM + partial BN statistics ----------------------------------
    y2d, part = pl.pallas_call(
        _conv_stats_kernel,
        out_shape=(jax.ShapeDtypeStruct((mp, cp), jnp.float32),
                   jax.ShapeDtypeStruct((num_m, 2, cp), jnp.float32)),
        grid_spec=pltpu.PrefetchScalarGridSpec(
            num_scalar_prefetch=0,
            grid=(num_m,),
            in_specs=[pl.BlockSpec((tm, kp), lambda i: (i, 0)),
                      pl.BlockSpec((kp, cp), lambda i: (0, 0))],
            out_specs=(pl.BlockSpec((tm, cp), lambda i: (i, 0)),
                       pl.BlockSpec((1, 2, cp), lambda i: (i, 0, 0))),
        ),
        compiler_params=pltpu.CompilerParams(
            dimension_semantics=("parallel",),
            vmem_limit_bytes=32 * 1024 * 1024),
        cost_estimate=cost1,
    )(patches_p, w2d)

    # ---- Tiny cross-tile reduction + BN scale/shift folding (XLA) ---------------
    tot = jnp.sum(part, axis=0)                    # (2, Cp)
    mean = tot[0] / m                              # divide by the TRUE M
    var = tot[1] / m - mean * mean                 # single-pass variance
    gpad = jnp.pad(gamma.astype(jnp.float32), (0, cp - cout))
    bpad = jnp.pad(beta.astype(jnp.float32), (0, cp - cout))
    scale = gpad * jax.lax.rsqrt(var + 1e-5)
    shift = bpad - mean * scale
    scale2d = scale.reshape(1, cp)
    shift2d = shift.reshape(1, cp)

    # ---- Phase 2: normalize + ReLU ----------------------------------------------
    out2d = pl.pallas_call(
        _bn_relu_kernel,
        out_shape=jax.ShapeDtypeStruct((mp, cp), jnp.float32),
        grid_spec=pltpu.PrefetchScalarGridSpec(
            num_scalar_prefetch=0,
            grid=(num_m,),
            in_specs=[pl.BlockSpec((tm, cp), lambda i: (i, 0)),
                      pl.BlockSpec((1, cp), lambda i: (0, 0)),
                      pl.BlockSpec((1, cp), lambda i: (0, 0))],
            out_specs=pl.BlockSpec((tm, cp), lambda i: (i, 0)),
        ),
        compiler_params=pltpu.CompilerParams(
            dimension_semantics=("parallel",),
            vmem_limit_bytes=32 * 1024 * 1024),
    )(y2d, scale2d, shift2d)

    # Strip padding, (M, Cout) -> (N, OH, OW, Cout) -> NCHW.
    out2d = out2d[:m, :cout]
    return jnp.transpose(out2d.reshape(n, oh, ow, cout), (0, 3, 1, 2))


def _reference(x, weight, bias, gamma, beta, *, stride, padding, dilation):
    """Pure-JAX reference: conv2d (+bias) + training-mode BN + ReLU."""
    y = jax.lax.conv_general_dilated(
        x, weight,
        window_strides=(stride, stride),
        padding=[(padding, padding), (padding, padding)],
        rhs_dilation=(dilation, dilation),
        dimension_numbers=("NCHW", "OIHW", "NCHW"),
    ) + bias.reshape(1, -1, 1, 1)
    mean = jnp.mean(y, axis=(0, 2, 3), keepdims=True)
    var = jnp.mean((y - mean) ** 2, axis=(0, 2, 3), keepdims=True)
    y = (y - mean) * jax.lax.rsqrt(var + 1e-5)
    y = y * gamma.reshape(1, -1, 1, 1) + beta.reshape(1, -1, 1, 1)
    return jnp.maximum(y, 0.0)


if __name__ == "__main__":
    # Module config: Conv2d(in_channels=4, out_channels=8, kernel_size=3, stride=1,
    #                       padding=1, bias=True, dilation=1)
    N, CIN, H, W = 2, 4, 16, 16
    COUT, KH, KW = 8, 3, 3
    STRIDE, PADDING, DILATION = 1, 1, 1

    key = jax.random.PRNGKey(0)
    kx, kw_, kb = jax.random.split(key, 3)

    x = jax.random.normal(kx, (N, CIN, H, W), dtype=jnp.float32)

    # Deterministic parameter init (PyTorch-style uniform fan-in bound).
    fan_in = CIN * KH * KW
    bound = 1.0 / (fan_in ** 0.5)
    weight = jax.random.uniform(kw_, (COUT, CIN, KH, KW), jnp.float32, -bound, bound)
    bias = jax.random.uniform(kb, (COUT,), jnp.float32, -bound, bound)
    gamma = jnp.ones((COUT,), jnp.float32)   # BatchNorm2d default weight init
    beta = jnp.zeros((COUT,), jnp.float32)   # BatchNorm2d default bias init

    # block_m=128 -> grid of 4 M-tiles for this toy shape (exercises the pipeline).
    out = conv_bn_relu(x, weight, bias, gamma, beta,
                       stride=STRIDE, padding=PADDING, dilation=DILATION,
                       block_m=128, mxu_dtype=jnp.float32)
    out = jax.block_until_ready(out)

    ref = _reference(x, weight, bias, gamma, beta,
                     stride=STRIDE, padding=PADDING, dilation=DILATION)
    assert out.shape == (N, COUT, H, W), out.shape
    assert jnp.allclose(out, ref, atol=1e-4, rtol=1e-4), "mismatch vs reference"

    print("KERNEL_OK")
</pallas_src>

<mosaic_0001>
module attributes {stable_mosaic.version = 11 : i64} {
  func.func @_conv_stats_kernel(%arg0: i32, %arg1: memref<128x128xf32, #tpu.memory_space<vmem>>, %arg2: memref<128x128xf32, #tpu.memory_space<vmem>>, %arg3: memref<128x128xf32, #tpu.memory_space<vmem>>, %arg4: memref<1x2x128xf32, #tpu.memory_space<vmem>>) attributes {dimension_semantics = [#tpu.dimension_semantics<parallel>], iteration_bounds = array<i64: 4>, scalar_prefetch = 0 : i64, scratch_operands = 0 : i64, tpu.core_type = #tpu.core_type<tc>, window_params = [{transform_indices = @transform_0, window_bounds = array<i64: 128, 128>}, {pipeline_mode = #tpu.pipeline_mode<synchronous>, transform_indices = @transform_1, window_bounds = array<i64: 128, 128>}, {transform_indices = @transform_2, window_bounds = array<i64: 128, 128>}, {transform_indices = @transform_3, window_bounds = array<i64: 1, 2, 128>}]} {
    %c0 = arith.constant 0 : index
    %c0_0 = arith.constant 0 : index
    %0 = vector.load %arg1[%c0, %c0_0] : memref<128x128xf32, #tpu.memory_space<vmem>>, vector<128x128xf32>
    %c0_1 = arith.constant 0 : index
    %c0_2 = arith.constant 0 : index
    %1 = vector.load %arg2[%c0_1, %c0_2] : memref<128x128xf32, #tpu.memory_space<vmem>>, vector<128x128xf32>
    %cst = arith.constant dense<0.000000e+00> : vector<128x128xf32>
    %2 = tpu.matmul %0, %1, %cst {dimension_numbers = #tpu.dot_dimension_numbers<[1], [0], [0], [1], [0, 0, 1, 1], [], []>} : vector<128x128xf32>, vector<128x128xf32>, vector<128x128xf32> -> vector<128x128xf32>
    %c0_3 = arith.constant 0 : index
    %c0_4 = arith.constant 0 : index
    %3 = vector.load %arg3[%c0_3, %c0_4] : memref<128x128xf32, #tpu.memory_space<vmem>>, vector<128x128xf32>
    tpu.vector_store %arg3[%c0_3, %c0_4], %2 {strides = array<i32>} : memref<128x128xf32, #tpu.memory_space<vmem>>, vector<128x128xf32>,
    %cst_5 = arith.constant dense<0.000000e+00> : vector<128xf32>
    %4 = vector.multi_reduction <add>, %2, %cst_5 [0] : vector<128x128xf32> to vector<128xf32>
    %5 = vector.shape_cast %4 : vector<128xf32> to vector<1x128xf32>
    %6 = arith.mulf %2, %2 : vector<128x128xf32>
    %cst_6 = arith.constant dense<0.000000e+00> : vector<128xf32>
    %7 = vector.multi_reduction <add>, %6, %cst_6 [0] : vector<128x128xf32> to vector<128xf32>
    %8 = vector.shape_cast %7 : vector<128xf32> to vector<1x128xf32>
    %9 = tpu.concatenate %5, %8 in 0 : vector<1x128xf32>, vector<1x128xf32> -> vector<2x128xf32>
    %10 = vector.shape_cast %9 : vector<2x128xf32> to vector<1x2x128xf32>
    %c0_7 = arith.constant 0 : index
    %c0_8 = arith.constant 0 : index
    %c0_9 = arith.constant 0 : index
    %11 = vector.load %arg4[%c0_7, %c0_8, %c0_9] : memref<1x2x128xf32, #tpu.memory_space<vmem>>, vector<1x2x128xf32>
    tpu.vector_store %arg4[%c0_7, %c0_8, %c0_9], %10 {strides = array<i32>} : memref<1x2x128xf32, #tpu.memory_space<vmem>>, vector<1x2x128xf32>,
    return
  }
  func.func @transform_0(%arg0: i32) -> (i32, i32) {
    %c0_i32 = arith.constant 0 : i32
    %c0_i32_0 = arith.constant 0 : i32
    return %arg0, %c0_i32 : i32, i32
  }
  func.func @transform_1(%arg0: i32) -> (i32, i32) {
    %c0_i32 = arith.constant 0 : i32
    %c0_i32_0 = arith.constant 0 : i32
    %c0_i32_1 = arith.constant 0 : i32
    return %c0_i32, %c0_i32_0 : i32, i32
  }
  func.func @transform_2(%arg0: i32) -> (i32, i32) {
    %c0_i32 = arith.constant 0 : i32
    %c0_i32_0 = arith.constant 0 : i32
    return %arg0, %c0_i32 : i32, i32
  }
  func.func @transform_3(%arg0: i32) -> (i32, i32, i32) {
    %c0_i32 = arith.constant 0 : i32
    %c0_i32_0 = arith.constant 0 : i32
    %c0_i32_1 = arith.constant 0 : i32
    return %arg0, %c0_i32, %c0_i32_0 : i32, i32, i32
  }
}

module attributes {stable_mosaic.version = 11 : i64} {
  func.func @_bn_relu_kernel(%arg0: i32, %arg1: memref<128x128xf32, #tpu.memory_space<vmem>>, %arg2: memref<1x128xf32, #tpu.memory_space<vmem>>, %arg3: memref<1x128xf32, #tpu.memory_space<vmem>>, %arg4: memref<128x128xf32, #tpu.memory_space<vmem>>) attributes {dimension_semantics = [#tpu.dimension_semantics<parallel>], iteration_bounds = array<i64: 4>, scalar_prefetch = 0 : i64, scratch_operands = 0 : i64, tpu.core_type = #tpu.core_type<tc>, window_params = [{transform_indices = @transform_0, window_bounds = array<i64: 128, 128>}, {pipeline_mode = #tpu.pipeline_mode<synchronous>, transform_indices = @transform_1, window_bounds = array<i64: 1, 128>}, {pipeline_mode = #tpu.pipeline_mode<synchronous>, transform_indices = @transform_2, window_bounds = array<i64: 1, 128>}, {transform_indices = @transform_3, window_bounds = array<i64: 128, 128>}]} {
    %c0 = arith.constant 0 : index
    %c0_0 = arith.constant 0 : index
    %0 = vector.load %arg1[%c0, %c0_0] : memref<128x128xf32, #tpu.memory_space<vmem>>, vector<128x128xf32>
    %c0_1 = arith.constant 0 : index
    %c0_2 = arith.constant 0 : index
    %1 = vector.load %arg2[%c0_1, %c0_2] : memref<1x128xf32, #tpu.memory_space<vmem>>, vector<1x128xf32>
    %2 = vector.broadcast %1 : vector<1x128xf32> to vector<128x128xf32>
    %3 = arith.mulf %0, %2 : vector<128x128xf32>
    %c0_3 = arith.constant 0 : index
    %c0_4 = arith.constant 0 : index
    %4 = vector.load %arg3[%c0_3, %c0_4] : memref<1x128xf32, #tpu.memory_space<vmem>>, vector<1x128xf32>
    %5 = vector.broadcast %4 : vector<1x128xf32> to vector<128x128xf32>
    %6 = arith.addf %3, %5 : vector<128x128xf32>
    %cst = arith.constant 0.000000e+00 : f32
    %7 = vector.broadcast %cst : f32 to vector<128x128xf32>
    %8 = arith.maximumf %6, %7 : vector<128x128xf32>
    %c0_5 = arith.constant 0 : index
    %c0_6 = arith.constant 0 : index
    %9 = vector.load %arg4[%c0_5, %c0_6] : memref<128x128xf32, #tpu.memory_space<vmem>>, vector<128x128xf32>
    tpu.vector_store %arg4[%c0_5, %c0_6], %8 {strides = array<i32>} : memref<128x128xf32, #tpu.memory_space<vmem>>, vector<128x128xf32>,
    return
  }
  func.func @transform_0(%arg0: i32) -> (i32, i32) {
    %c0_i32 = arith.constant 0 : i32
    %c0_i32_0 = arith.constant 0 : i32
    return %arg0, %c0_i32 : i32, i32
  }
  func.func @transform_1(%arg0: i32) -> (i32, i32) {
    %c0_i32 = arith.constant 0 : i32
    %c0_i32_0 = arith.constant 0 : i32
    %c0_i32_1 = arith.constant 0 : i32
    return %c0_i32, %c0_i32_0 : i32, i32
  }
  func.func @transform_2(%arg0: i32) -> (i32, i32) {
    %c0_i32 = arith.constant 0 : i32
    %c0_i32_0 = arith.constant 0 : i32
    %c0_i32_1 = arith.constant 0 : i32
    return %c0_i32, %c0_i32_0 : i32, i32
  }
  func.func @transform_3(%arg0: i32) -> (i32, i32) {
    %c0_i32 = arith.constant 0 : i32
    %c0_i32_0 = arith.constant 0 : i32
    return %arg0, %c0_i32 : i32, i32
  }
}

</mosaic_0001>

<bundles_post_ra>
// kernel: conv_bn_relu.3
= control target key start
LH: loop header
LB: loop body
LE: loop exit
PB: predicated region body
PF: predicated region fallthrough
CT: control target
= control target key end

     0   :  { %s373_s12 = smov 0   ;;  %s468_s0 = inlined_call_operand.vmem [shape: f32[512,128], index: 0, kind: input, shape index: {}]   ;;  %s469_s1 = inlined_call_operand.vmem [shape: f32[1,128], index: 1, kind: input, shape index: {}]   ;;  %s470_s2 = inlined_call_operand.vmem [shape: f32[1,128], index: 2, kind: input, shape index: {}]   ;;  %s471_s3 = inlined_call_operand.vmem [shape: f32[512,128], index: 3, kind: output, shape index: {}]  }
   0x1 LB: > { %s324_s13 = sadd.s32 4294967295, %s351_s12   ;;  %p328_p0 = scmp.ge.s32.totalorder %s351_s12, 1  ;;  %s351_s12 = sphi %s373_s12, %s13_s12  }
   0x2   : > { %p138_p1 = scmp.lt.s32.totalorder %s351_s12, 5 }
   0x4   : > { %p139_p2 = pnand %p328_p0, %p138_p1 }
   0x5   : > { %s329_s14 = sshll.u32 (!%p139_p2), %s324_s13, 4  ;;  %v384_v0 = vld [vmem:[%s469_s1] ss:$0 sm:$0xff] (!%p139_p2) }
   0x6   : > { %142 = sbr.rel (%p139_p2) target bundleno = 34 (0x22), region = 32  ;;  %p163_p3 = scmp.lt.s32.totalorder (!%p139_p2), %s329_s14, 63  ;;  %v394_v1 = vld [vmem:[%s470_s2] ss:$0 sm:$0xff] (!%p139_p2) }
   0xd   : > { %s473_s14 = smov (!%p163_p3, %s329_s14), 63 }
   0xe   : > { %s330_s15 = sshll.u32 %s473_s14, 3 }
   0xf   : > { %s389_s20 = scalar_lea.vmem %s468_s0, %s330_s15  ;;  %s417_s25 = scalar_lea.vmem %s471_s3, %s330_s15 }
  0x10   : > { %v174_v2 = vld [vmem:[%s389_s20] sm:$0xff]  ;;  %v175_v3 = vld [vmem:[%s389_s20 + $0x8] sm:$0xff]  ;;  %v176_v4 = vld [vmem:[%s389_s20 + $0x10] sm:$0xff] }
  0x11   : > { %v197_v5 = vmul.f32 %v384_v0, %v174_v2  ;;  %v198_v6 = vmul.f32 %v384_v0, %v175_v3  ;;  %v199_v7 = vmul.f32 %v384_v0, %v176_v4  ;;  %v177_v8 = vld [vmem:[%s389_s20 + $0x18] sm:$0xff]  ;;  %v178_v9 = vld [vmem:[%s389_s20 + $0x20] sm:$0xff]  ;;  %v179_v10 = vld [vmem:[%s389_s20 + $0x28] sm:$0xff] }
  0x12   : > { %v200_v11 = vmul.f32 %v384_v0, %v177_v8  ;;  %v201_v12 = vmul.f32 %v384_v0, %v178_v9  ;;  %v202_v13 = vmul.f32 %v384_v0, %v179_v10  ;;  %v180_v14 = vld [vmem:[%s389_s20 + $0x30] sm:$0xff]  ;;  %v181_v15 = vld [vmem:[%s389_s20 + $0x38] sm:$0xff]  ;;  %v182_v24 = vld [vmem:[%s389_s20 + $0x40] sm:$0xff] }
  0x13   : > { %v220_v16 = vadd.f32 %v394_v1, %v197_v5  ;;  %v221_v17 = vadd.f32 %v394_v1, %v198_v6  ;;  %v222_v18 = vadd.f32 %v394_v1, %v199_v7  ;;  %v203_v19 = vmul.f32 %v384_v0, %v180_v14  ;;  %v183_v25 = vld [vmem:[%s389_s20 + $0x48] sm:$0xff]  ;;  %v184_v26 = vld [vmem:[%s389_s20 + $0x50] sm:$0xff]  ;;  %v185_v31 = vld [vmem:[%s389_s20 + $0x58] sm:$0xff] }
  0x14   : > { %v223_v20 = vadd.f32 %v394_v1, %v200_v11  ;;  %v224_v21 = vadd.f32 %v394_v1, %v201_v12  ;;  %v225_v22 = vadd.f32 %v394_v1, %v202_v13  ;;  %v204_v23 = vmul.f32 %v384_v0, %v181_v15  ;;  %v186_v32 = vld [vmem:[%s389_s20 + $0x60] sm:$0xff]  ;;  %v187_v33 = vld [vmem:[%s389_s20 + $0x68] sm:$0xff]  ;;  %v188_v38 = vld [vmem:[%s389_s20 + $0x70] sm:$0xff] }
  0x15   : > { %v236_v27 = vmax.f32 %v220_v16, 0.0  ;;  %v237_v28 = vmax.f32 %v221_v17, 0.0  ;;  %v238_v29 = vmax.f32 %v222_v18, 0.0  ;;  %v226_v30 = vadd.f32 %v394_v1, %v203_v19  ;;  %v189_v43 = vld [vmem:[%s389_s20 + $0x78] sm:$0xff] }
  0x16   : > { %v239_v34 = vmax.f32 %v223_v20, 0.0  ;;  %v240_v35 = vmax.f32 %v224_v21, 0.0  ;;  %v241_v36 = vmax.f32 %v225_v22, 0.0  ;;  %v227_v37 = vadd.f32 %v394_v1, %v204_v23 }
  0x17   : > { %252 = vst [vmem:[%s417_s25] sm:$0xff] %v236_v27  ;;  %253 = vst [vmem:[%s417_s25 + $0x8] sm:$0xff] %v237_v28  ;;  %v242_v39 = vmax.f32 %v226_v30, 0.0  ;;  %v205_v40 = vmul.f32 %v384_v0, %v182_v24  ;;  %v206_v41 = vmul.f32 %v384_v0, %v183_v25  ;;  %v207_v42 = vmul.f32 %v384_v0, %v184_v26 }
  0x18   : > { %254 = vst [vmem:[%s417_s25 + $0x10] sm:$0xff] %v238_v29  ;;  %255 = vst [vmem:[%s417_s25 + $0x18] sm:$0xff] %v239_v34  ;;  %v243_v44 = vmax.f32 %v227_v37, 0.0  ;;  %v208_v45 = vmul.f32 %v384_v0, %v185_v31  ;;  %v209_v46 = vmul.f32 %v384_v0, %v186_v32  ;;  %v210_v47 = vmul.f32 %v384_v0, %v187_v33 }
  0x19   : > { %256 = vst [vmem:[%s417_s25 + $0x20] sm:$0xff] %v240_v35  ;;  %257 = vst [vmem:[%s417_s25 + $0x28] sm:$0xff] %v241_v36  ;;  %v228_v48 = vadd.f32 %v394_v1, %v205_v40  ;;  %v229_v49 = vadd.f32 %v394_v1, %v206_v41  ;;  %v230_v50 = vadd.f32 %v394_v1, %v207_v42 }
  0x1a   : > { %258 = vst [vmem:[%s417_s25 + $0x30] sm:$0xff] %v242_v39  ;;  %v211_v51 = vmul.f32 %v384_v0, %v188_v38  ;;  %259 = vst [vmem:[%s417_s25 + $0x38] sm:$0xff] %v243_v44  ;;  %v231_v52 = vadd.f32 %v394_v1, %v208_v45  ;;  %v232_v53 = vadd.f32 %v394_v1, %v209_v46 }
  0x1b   : > { %v233_v54 = vadd.f32 %v394_v1, %v210_v47  ;;  %v212_v55 = vmul.f32 %v384_v0, %v189_v43  ;;  %v244_v56 = vmax.f32 %v228_v48, 0.0  ;;  %v245_v57 = vmax.f32 %v229_v49, 0.0 }
  0x1c   : > { %v246_v58 = vmax.f32 %v230_v50, 0.0  ;;  %v234_v59 = vadd.f32 %v394_v1, %v211_v51  ;;  %v247_v60 = vmax.f32 %v231_v52, 0.0  ;;  %v248_v61 = vmax.f32 %v232_v53, 0.0 }
  0x1d   : > { %v249_v62 = vmax.f32 %v233_v54, 0.0  ;;  %v235_v63 = vadd.f32 %v394_v1, %v212_v55  ;;  %260 = vst [vmem:[%s417_s25 + $0x40] sm:$0xff] %v244_v56  ;;  %261 = vst [vmem:[%s417_s25 + $0x48] sm:$0xff] %v245_v57 }
  0x1e   : > { %262 = vst [vmem:[%s417_s25 + $0x50] sm:$0xff] %v246_v58  ;;  %v250_v2 = vmax.f32 %v234_v59, 0.0  ;;  %263 = vst [vmem:[%s417_s25 + $0x58] sm:$0xff] %v247_v60 }
  0x1f   : > { %264 = vst [vmem:[%s417_s25 + $0x60] sm:$0xff] %v248_v61  ;;  %265 = vst [vmem:[%s417_s25 + $0x68] sm:$0xff] %v249_v62  ;;  %v251_v0 = vmax.f32 %v235_v63, 0.0 }
  0x20   : > { %266 = vst [vmem:[%s417_s25 + $0x70] sm:$0xff] %v250_v2 }
  0x21   : > { %267 = vst [vmem:[%s417_s25 + $0x78] sm:$0xff] %v251_v0 }
  0x22 PF: > { %s13_s12 = sadd.s32 1, %s351_s12  }
  0x23   : > { %p10_p4 = scmp.ge.s32.totalorder %s13_s12, 6  }
  0x25   :  { %12 = sbr.rel (!%p10_p4) target bundleno = 1 (0x1), region = 62 }

// kernel: conv_bn_relu.2
= control target key start
LH: loop header
LB: loop body
LE: loop exit
PB: predicated region body
PF: predicated region fallthrough
CT: control target
= control target key end

     0   :  { %s710_s12 = smov 0   ;;  %s826_s0 = inlined_call_operand.vmem [shape: f32[512,128], index: 0, kind: input, shape index: {}]   ;;  %s827_s1 = inlined_call_operand.vmem [shape: f32[128,128], index: 1, kind: input, shape index: {}]   ;;  %s828_s2 = inlined_call_operand.vmem [shape: f32[512,128], index: 2, kind: output, shape index: {0}]   ;;  %s829_s3 = inlined_call_operand.vmem [shape: f32[4,2,128], index: 3, kind: output, shape index: {1}]  }
   0x1 LB: > { %s716_s13 = sadd.s32 4294967295, %s688_s12   ;;  %p530_p0 = scmp.ge.s32.totalorder %s688_s12, 1  ;;  %s688_s12 = sphi %s710_s12, %s14_s12  }
   0x2   : > { %p141_p1 = scmp.lt.s32.totalorder %s688_s12, 5 }
   0x4   : > { %p142_p2 = pnand %p530_p0, %p141_p1 }
   0x5   : > { %v201_v0 = vld [vmem:[%s827_s1] sm:$0xff] (!%p142_p2)  ;;  %v202_v1 = vld [vmem:[%s827_s1 + $0x8] sm:$0xff] (!%p142_p2)  ;;  %v203_v2 = vld [vmem:[%s827_s1 + $0x10] sm:$0xff] (!%p142_p2)  ;;  %s531_s20 = sshll.u32 (!%p142_p2), %s716_s13, 4  ;;  %p181_p4 = scmp.lt.s32.totalorder (!%p142_p2), %s716_s13, 3  ;;  %vm436_vm0 = vcmask (!%p142_p2), 1040384  }
   0x6   : > { %145 = sbr.rel (%p142_p2) target bundleno = 301 (0x12d), region = 28  ;;  %v626_v3 = vpack.c.bf16 (!%p142_p2), %v202_v1, %v201_v0  ;;  %v204_v4 = vld [vmem:[%s827_s1 + $0x18] sm:$0xff] (!%p142_p2)  ;;  %p170_p3 = scmp.lt.s32.totalorder (!%p142_p2), %s531_s20, 63  ;;  %v205_v6 = vld [vmem:[%s827_s1 + $0x20] sm:$0xff] (!%p142_p2)  ;;  %v206_v7 = vld [vmem:[%s827_s1 + $0x28] sm:$0xff] (!%p142_p2) }
   0x7   : > { %v630_v5 = vpack.c.bf16 (!%p142_p2), %v204_v4, %v203_v2  ;;  %v634_v8 = vpack.c.bf16 (!%p142_p2), %v206_v7, %v205_v6  ;;  %v207_v9 = vld [vmem:[%s827_s1 + $0x30] sm:$0xff] (!%p142_p2)  ;;  %v208_v10 = vld [vmem:[%s827_s1 + $0x38] sm:$0xff] (!%p142_p2)  ;;  %v209_v14 = vld [vmem:[%s827_s1 + $0x40] sm:$0xff] (!%p142_p2) }
   0x8   : > { %627 = vmatprep.subr.bf16.mxu0 (!%p142_p2), %v626_v3  ;;  %658 = vmatprep.subr.bf16.mxu1 (!%p142_p2), %v626_v3  ;;  %v638_v12 = vpack.c.bf16 (!%p142_p2), %v208_v10, %v207_v9  ;;  %v210_v15 = vld [vmem:[%s827_s1 + $0x48] sm:$0xff] (!%p142_p2)  ;;  %v211_v17 = vld [vmem:[%s827_s1 + $0x50] sm:$0xff] (!%p142_p2)  ;;  %v212_v18 = vld [vmem:[%s827_s1 + $0x58] sm:$0xff] (!%p142_p2) }
   0x9   : > { %629 = vmatpush3.bf16.msra.mxu0 (!%p142_p2), %v626_v3  ;;  %666 = vmatpush3.bf16.msra.mxu1 (!%p142_p2), %v626_v3  ;;  %v642_v16 = vpack.c.bf16 (!%p142_p2), %v210_v15, %v209_v14  ;;  %v646_v19 = vpack.c.bf16 (!%p142_p2), %v212_v18, %v211_v17  ;;  %v213_v20 = vld [vmem:[%s827_s1 + $0x60] sm:$0xff] (!%p142_p2)  ;;  %v214_v21 = vld [vmem:[%s827_s1 + $0x68] sm:$0xff] (!%p142_p2)  ;;  %v215_v23 = vld [vmem:[%s827_s1 + $0x70] sm:$0xff] (!%p142_p2) }
   0xa   : > { %631 = vmatprep.subr.bf16.mxu0 (!%p142_p2), %v630_v5  ;;  %659 = vmatprep.subr.bf16.mxu1 (!%p142_p2), %v630_v5  ;;  %v650_v22 = vpack.c.bf16 (!%p142_p2), %v214_v21, %v213_v20  ;;  %v216_v24 = vld [vmem:[%s827_s1 + $0x78] sm:$0xff] (!%p142_p2) }
   0xb   : > { %v654_v25 = vpack.c.bf16 (!%p142_p2), %v216_v24, %v215_v23 }
   0xd   : > { %s831_s20 = smov (!%p170_p3, %s531_s20), 63  ;;  %633 = vmatpush3.bf16.msra.mxu0 %v630_v5  ;;  %667 = vmatpush3.bf16.msra.mxu1 %v630_v5  ;;  %s833_s13 = smov (!%p181_p4, %s716_s13), 3 }
   0xe   : > { %s532_s27 = sshll.u32 %s831_s20, 3  ;;  %635 = vmatprep.subr.bf16.mxu0 %v634_v8  ;;  %660 = vmatprep.subr.bf16.mxu1 %v634_v8  ;;  %s535_s20 = sshll.u32 %s833_s13, 1 }
   0xf   : > { %s753_s7 = scalar_lea.vmem %s826_s0, %s532_s27  ;;  %s800_s30 = scalar_lea.vmem %s828_s2, %s532_s27 }
  0x10   : > { %v185_v11 = vld [vmem:[%s753_s7] sm:$0xff]  ;;  %v186_v26 = vld [vmem:[%s753_s7 + $0x8] sm:$0xff]  ;;  %v187_v28 = vld [vmem:[%s753_s7 + $0x10] sm:$0xff]  ;;  %s184_s5 = scalar_lea.vmem %s829_s3, %s535_s20 }
  0x11   : > { %v193_v13 = vld [vmem:[%s753_s7 + $0x40] sm:$0xff]  ;;  %602 = vmatprep.mubr.f32.mxu0 %v185_v11  ;;  %637 = vmatpush3.bf16.msra.mxu0 %v634_v8  ;;  %v194_v27 = vld [vmem:[%s753_s7 + $0x48] sm:$0xff]  ;;  %v195_v29 = vld [vmem:[%s753_s7 + $0x50] sm:$0xff] }
  0x12   : > { %614 = vmatprep.mubr.f32.mxu1 %v193_v13  ;;  %668 = vmatpush3.bf16.msra.mxu1 %v634_v8  ;;  %v188_v30 = vld [vmem:[%s753_s7 + $0x18] sm:$0xff]  ;;  %v189_v32 = vld [vmem:[%s753_s7 + $0x20] sm:$0xff]  ;;  %v190_v34 = vld [vmem:[%s753_s7 + $0x28] sm:$0xff] }
  0x13   : > { %639 = vmatprep.subr.bf16.mxu0 %v638_v12  ;;  %661 = vmatprep.subr.bf16.mxu1 %v638_v12  ;;  %v196_v31 = vld [vmem:[%s753_s7 + $0x58] sm:$0xff]  ;;  %v197_v33 = vld [vmem:[%s753_s7 + $0x60] sm:$0xff]  ;;  %v198_v35 = vld [vmem:[%s753_s7 + $0x68] sm:$0xff] }
  0x14   : > { %v191_v36 = vld [vmem:[%s753_s7 + $0x30] sm:$0xff]  ;;  %v192_v38 = vld [vmem:[%s753_s7 + $0x38] sm:$0xff] }
  0x15   : > { %641 = vmatpush3.bf16.msra.mxu0 %v638_v12  ;;  %v199_v37 = vld [vmem:[%s753_s7 + $0x70] sm:$0xff]  ;;  %v200_v39 = vld [vmem:[%s753_s7 + $0x78] sm:$0xff] }
  0x16   : > { %669 = vmatpush3.bf16.msra.mxu1 %v638_v12  ;;  %643 = vmatprep.subr.bf16.mxu0 %v642_v16 }
  0x17   : > { %662 = vmatprep.subr.bf16.mxu1 %v642_v16 }
  0x19   : > { %645 = vmatpush3.bf16.msra.mxu0 %v642_v16 }
  0x1a   : > { %670 = vmatpush3.bf16.msra.mxu1 %v642_v16  ;;  %647 = vmatprep.subr.bf16.mxu0 %v646_v19 }
  0x1b   : > { %663 = vmatprep.subr.bf16.mxu1 %v646_v19 }
  0x1d   : > { %649 = vmatpush3.bf16.msra.mxu0 %v646_v19 }
  0x1e   : > { %671 = vmatpush3.bf16.msra.mxu1 %v646_v19  ;;  %651 = vmatprep.subr.bf16.mxu0 %v650_v22 }
  0x1f   : > { %664 = vmatprep.subr.bf16.mxu1 %v650_v22 }
  0x21   : > { %653 = vmatpush3.bf16.msra.mxu0 %v650_v22 }
  0x22   : > { %672 = vmatpush3.bf16.msra.mxu1 %v650_v22  ;;  %655 = vmatprep.subr.bf16.mxu0 %v654_v25 }
  0x23   : > { %665 = vmatprep.subr.bf16.mxu1 %v654_v25 }
  0x25   : > { %657 = vmatpush3.bf16.msra.mxu0 %v654_v25 }
  0x26   : > { %673 = vmatpush3.bf16.msra.mxu1 %v654_v25 }
  0x28   : > { %603 = vmatmul.mubr.f32.vlgmr.msra.gmra.mrb[0].mxu0 %v186_v26 }
  0x29   : > { %615 = vmatmul.mubr.f32.vlgmr.msra.gmra.mrb[0].mxu1 %v194_v27  ;;  %605 = vmatprep.mubr.f32.mxu0 %v187_v28 }
  0x2a   : > { %617 = vmatprep.mubr.f32.mxu1 %v195_v29 }
  0x2c   : > { %606 = vmatmul.mubr.f32.gmra.mrb[2].mxu0 %v188_v30 }
  0x2d   : > { %618 = vmatmul.mubr.f32.gmra.mrb[2].mxu1 %v196_v31  ;;  %608 = vmatprep.mubr.f32.mxu0 %v189_v32 }
  0x2e   : > { %620 = vmatprep.mubr.f32.mxu1 %v197_v33 }
  0x30   : > { %609 = vmatmul.mubr.f32.gmra.mrb[4].mxu0 %v190_v34 }
  0x31   : > { %621 = vmatmul.mubr.f32.gmra.mrb[4].mxu1 %v198_v35  ;;  %611 = vmatprep.mubr.f32.mxu0 %v191_v36 }
  0x32   : > { %623 = vmatprep.mubr.f32.mxu1 %v199_v37 }
  0x34   : > { %612 = vmatmul.mubr.f32.gmra.mrb[6].mxu0 %v192_v38 }
  0x35   : > { %624 = vmatmul.mubr.f32.gmra.mrb[6].mxu1 %v200_v39 }
  0xfb   : > { %v604_v40 = vpop.f32.mrb[0].mxu0 }
  0xfc   : > { %v616_v41 = vpop.f32.mrb[0].mxu1  ;;  %363 = vst [vmem:[%s800_s30 + $0x8] sm:$0xff] %v604_v40  ;;  %v400_v42 = vmul.f32 %v604_v40, %v604_v40  ;;  %v283_v43 = vpop.f32.mrb[1].mxu0 }
  0xfd   : > { %371 = vst [vmem:[%s800_s30 + $0x48] sm:$0xff] %v616_v41  ;;  %v323_v44 = vpop.f32.mrb[1].mxu1  ;;  %362 = vst [vmem:[%s800_s30] sm:$0xff] %v283_v43  ;;  %v378_v45 = vadd.f32 %v604_v40, %v283_v43  ;;  %v399_v46 = vmul.f32 %v283_v43, %v283_v43  ;;  %v408_v16 = vmul.f32 %v616_v41, %v616_v41 }
  0xfe   : > { %370 = vst [vmem:[%s800_s30 + $0x40] sm:$0xff] %v323_v44  ;;  %v407_v13 = vmul.f32 %v323_v44, %v323_v44 }
  0xff   : > { %v415_v47 = vadd.f32 %v400_v42, %v399_v46  ;;  %v607_v48 = vpop.f32.mrb[2].mxu0 }
 0x100   : > { %v619_v49 = vpop.f32.mrb[2].mxu1  ;;  %365 = vst [vmem:[%s800_s30 + $0x18] sm:$0xff] %v607_v48  ;;  %v293_v50 = vpop.f32.mrb[3].mxu0  ;;  %v402_v54 = vmul.f32 %v607_v48, %v607_v48 }
 0x101   : > { %373 = vst [vmem:[%s800_s30 + $0x58] sm:$0xff] %v619_v49  ;;  %v333_v51 = vpop.f32.mrb[3].mxu1  ;;  %364 = vst [vmem:[%s800_s30 + $0x10] sm:$0xff] %v293_v50  ;;  %v379_v52 = vadd.f32 %v378_v45, %v293_v50  ;;  %v401_v53 = vmul.f32 %v293_v50, %v293_v50  ;;  %v410_v22 = vmul.f32 %v619_v49, %v619_v49 }
 0x102   : > { %372 = vst [vmem:[%s800_s30 + $0x50] sm:$0xff] %v333_v51  ;;  %v409_v19 = vmul.f32 %v333_v51, %v333_v51 }
 0x103   : > { %v416_v55 = vadd.f32 %v415_v47, %v401_v53  ;;  %v610_v56 = vpop.f32.mrb[4].mxu0  ;;  %v380_v57 = vadd.f32 %v607_v48, %v379_v52 }
 0x104   : > { %v622_v58 = vpop.f32.mrb[4].mxu1  ;;  %367 = vst [vmem:[%s800_s30 + $0x28] sm:$0xff] %v610_v56  ;;  %v303_v59 = vpop.f32.mrb[5].mxu0  ;;  %v404_v0 = vmul.f32 %v610_v56, %v610_v56 }
 0x105   : > { %375 = vst [vmem:[%s800_s30 + $0x68] sm:$0xff] %v622_v58  ;;  %v343_v60 = vpop.f32.mrb[5].mxu1  ;;  %366 = vst [vmem:[%s800_s30 + $0x20] sm:$0xff] %v303_v59  ;;  %v381_v61 = vadd.f32 %v380_v57, %v303_v59  ;;  %v403_v62 = vmul.f32 %v303_v59, %v303_v59  ;;  %v417_v63 = vadd.f32 %v416_v55, %v402_v54 }
 0x106   : > { %374 = vst [vmem:[%s800_s30 + $0x60] sm:$0xff] %v343_v60  ;;  %v411_v25 = vmul.f32 %v343_v60, %v343_v60  ;;  %v412_v28 = vmul.f32 %v622_v58, %v622_v58 }
 0x107   : > { %v418_v1 = vadd.f32 %v417_v63, %v403_v62  ;;  %v613_v2 = vpop.f32.mrb[6].mxu0  ;;  %v382_v3 = vadd.f32 %v610_v56, %v381_v61 }
 0x108   : > { %v625_v4 = vpop.f32.mrb[6].mxu1  ;;  %369 = vst [vmem:[%s800_s30 + $0x38] sm:$0xff] %v613_v2  ;;  %v313_v5 = vpop.f32.mrb[7].mxu0  ;;  %v406_v10 = vmul.f32 %v613_v2, %v613_v2 }
 0x109   : > { %377 = vst [vmem:[%s800_s30 + $0x78] sm:$0xff] %v625_v4  ;;  %v353_v6 = vpop.f32.mrb[7].mxu1  ;;  %368 = vst [vmem:[%s800_s30 + $0x30] sm:$0xff] %v313_v5  ;;  %v383_v7 = vadd.f32 %v382_v3, %v313_v5  ;;  %v405_v8 = vmul.f32 %v313_v5, %v313_v5  ;;  %v419_v9 = vadd.f32 %v418_v1, %v404_v0 }
 0x10a   : > { %376 = vst [vmem:[%s800_s30 + $0x70] sm:$0xff] %v353_v6  ;;  %v413_v31 = vmul.f32 %v353_v6, %v353_v6  ;;  %v414_v34 = vmul.f32 %v625_v4, %v625_v4 }
 0x10b   : > { %v384_v11 = vadd.f32 %v613_v2, %v383_v7  ;;  %v420_v12 = vadd.f32 %v419_v9, %v405_v8 }
 0x10d   : > { %v421_v14 = vadd.f32 %v420_v12, %v406_v10  ;;  %v385_v15 = vadd.f32 %v384_v11, %v323_v44 }
 0x10f   : > { %v422_v17 = vadd.f32 %v421_v14, %v407_v13  ;;  %v386_v18 = vadd.f32 %v616_v41, %v385_v15 }
 0x111   : > { %v387_v20 = vadd.f32 %v386_v18, %v333_v51  ;;  %v423_v21 = vadd.f32 %v422_v17, %v408_v16 }
 0x113   : > { %v424_v23 = vadd.f32 %v423_v21, %v409_v19  ;;  %v388_v24 = vadd.f32 %v619_v49, %v387_v20 }
 0x115   : > { %v389_v26 = vadd.f32 %v388_v24, %v343_v60  ;;  %v425_v27 = vadd.f32 %v424_v23, %v410_v22 }
 0x117   : > { %v426_v29 = vadd.f32 %v425_v27, %v411_v25  ;;  %v390_v30 = vadd.f32 %v622_v58, %v389_v26 }
 0x119   : > { %v391_v32 = vadd.f32 %v390_v30, %v353_v6  ;;  %v427_v33 = vadd.f32 %v426_v29, %v412_v28 }
 0x11b   : > { %v392_v35 = vadd.f32 %v625_v4, %v391_v32  ;;  %v428_v36 = vadd.f32 %v427_v33, %v413_v31 }
 0x11d   : > { %v393_v37 = vrot.slane %v392_v35, 4  ;;  %v429_v38 = vadd.f32 %v428_v36, %v414_v34 }
 0x11f   : > { %v394_v39 = vadd.f32 %v393_v37, %v392_v35  ;;  %v430_v40 = vrot.slane %v429_v38, 4 }
 0x121   : > { %v395_v41 = vrot.slane %v394_v39, 2  ;;  %v431_v42 = vadd.f32 %v430_v40, %v429_v38 }
 0x123   : > { %v396_v43 = vadd.f32 %v395_v41, %v394_v39  ;;  %v432_v44 = vrot.slane %v431_v42, 2 }
 0x125   : > { %v397_v45 = vrot.slane %v396_v43, 1  ;;  %v433_v46 = vadd.f32 %v432_v44, %v431_v42 }
 0x127   : > { %v434_v47 = vrot.slane %v433_v46, 1  ;;  %v398_v48 = vadd.f32 %v397_v45, %v396_v43 }
 0x129   : > { %v435_v49 = vadd.f32 %v434_v47, %v433_v46 }
 0x12b   : > { %v437_v50 = vsel %vm436_vm0, %v398_v48, %v435_v49 }
 0x12c   : > { %438 = vst [vmem:[%s184_s5] sm:$0x3] %v437_v50 }
 0x12d PF: > { %s14_s12 = sadd.s32 1, %s688_s12  }
 0x12e   : > { %p11_p5 = scmp.ge.s32.totalorder %s14_s12, 6  }
 0x130   :  { %13 = sbr.rel (!%p11_p5) target bundleno = 1 (0x1), region = 70 }

</bundles_post_ra>
